<compile_context>
chip_gen: v6e
topology: v6e:2x2x1
jax: 0.10.0
libtpu: 0.0.40
codegen_flags: <defaults>
</compile_context>

<pallas_src>
import functools

import jax
import jax.numpy as jnp
from jax.experimental import pallas as pl
from jax.experimental.pallas import tpu as pltpu


def _round_up(x, m):
    return (x + m - 1) // m * m


def _lineconv_kernel(tm, a_ref, x_ref, wt_ref, b_ref, o_ref, act_ref, h_ref):
    """Fused LineConv forward, grid = (n_layers, n_row_tiles).

    a_ref  : (tm, N_pad)        bf16  row tile of the dense(ified) coef matrix
    x_ref  : (N_pad, E_pad)     f32   edge embeddings (whole array, resident)
    wt_ref : (1, E_pad, E_pad)  bf16  W.T of the current layer
    b_ref  : (1, 1, E_pad)      f32   bias of the current layer
    o_ref  : (N_pad, E_pad)     f32   resident output = sum of [x, z_1..z_L]
    act_ref: (N_pad, E_pad)     bf16  scratch — previous-layer activation
    h_ref  : (N_pad, E_pad)     bf16  scratch — h = act @ W.T + b (this layer)
    """
    lyr = pl.program_id(0)
    r = pl.program_id(1)

    @pl.when(jnp.logical_and(lyr == 0, r == 0))
    def _init():
        x0 = x_ref[...]
        act_ref[...] = x0.astype(jnp.bfloat16)
        o_ref[...] = x0                      # residual starts with x itself

    @pl.when(r == 0)
    def _linear():
        # nn.Linear: h = act @ W.T + b, computed once per layer for all rows.
        h = jnp.dot(act_ref[...], wt_ref[0],
                    preferred_element_type=jnp.float32) + b_ref[0]
        h_ref[...] = h.astype(jnp.bfloat16)

    # torch.sparse.mm(coef, h) == A @ h   (bf16 x bf16 -> f32 on the MXU)
    z = jnp.dot(a_ref[...], h_ref[...], preferred_element_type=jnp.float32)

    row0 = pl.multiple_of(r * tm, tm)
    act_ref[pl.ds(row0, tm), :] = z.astype(jnp.bfloat16)   # input to next layer
    o_ref[pl.ds(row0, tm), :] = o_ref[pl.ds(row0, tm), :] + z


def lineconv_forward(coef, x, weights_t, biases, *, tm=128):
    """coef: (N,N) dense coefficient matrix, x: (N,E),
    weights_t: (L,E,E) (already W.T), biases: (L,1,E).  Returns (N,E) f32."""
    n_layers, E, _ = weights_t.shape
    N = x.shape[0]
    assert tm % 8 == 0
    E_pad = _round_up(E, 128)
    N_pad = _round_up(N, tm)

    # Zero padding is mathematically transparent: padded rows/cols of A are
    # zero and padded cols of W/b are zero, so every real row/col of every
    # intermediate is untouched.
    a_p = (jnp.zeros((N_pad, N_pad), jnp.float32)
           .at[:N, :N].set(coef).astype(jnp.bfloat16))
    x_p = jnp.zeros((N_pad, E_pad), jnp.float32).at[:N, :E].set(x)
    w_p = (jnp.zeros((n_layers, E_pad, E_pad), jnp.float32)
           .at[:, :E, :E].set(weights_t).astype(jnp.bfloat16))
    b_p = jnp.zeros((n_layers, 1, E_pad), jnp.float32).at[:, :, :E].set(biases)

    n_rt = N_pad // tm
    kernel = functools.partial(_lineconv_kernel, tm)

    flops = n_layers * (2 * N_pad * E_pad * E_pad + 2 * N_pad * N_pad * E_pad)
    bytes_accessed = (n_layers * N_pad * N_pad * 2        # A streamed per layer
                      + 2 * N_pad * E_pad * 4             # x in, out (once)
                      + n_layers * (E_pad * E_pad * 2 + E_pad * 4))

    out_p = pl.pallas_call(
        kernel,
        out_shape=jax.ShapeDtypeStruct((N_pad, E_pad), jnp.float32),
        grid_spec=pltpu.PrefetchScalarGridSpec(
            num_scalar_prefetch=0,
            grid=(n_layers, n_rt),
            in_specs=[
                pl.BlockSpec((tm, N_pad), lambda l, r: (r, 0)),           # A tile
                pl.BlockSpec((N_pad, E_pad), lambda l, r: (0, 0)),        # x
                pl.BlockSpec((1, E_pad, E_pad), lambda l, r: (l, 0, 0)),  # W.T[l]
                pl.BlockSpec((1, 1, E_pad), lambda l, r: (l, 0, 0)),      # b[l]
            ],
            # Constant block index -> output stays resident in VMEM and is
            # written back to HBM exactly once at the end of the grid.
            out_specs=pl.BlockSpec((N_pad, E_pad), lambda l, r: (0, 0)),
            scratch_shapes=[
                pltpu.VMEM((N_pad, E_pad), jnp.bfloat16),   # previous activation
                pltpu.VMEM((N_pad, E_pad), jnp.bfloat16),   # h = act @ W.T + b
            ],
        ),
        compiler_params=pltpu.CompilerParams(
            # Row axis cannot be "parallel": layer l+1 needs ALL rows of layer l.
            dimension_semantics=("arbitrary", "arbitrary"),
            vmem_limit_bytes=32 * 1024 * 1024,
        ),
        cost_estimate=pl.CostEstimate(flops=flops, transcendentals=0,
                                      bytes_accessed=bytes_accessed),
    )(a_p, x_p, w_p, b_p)
    return out_p[:N, :E]


def lineconv_reference(coef, x, weights_t, biases, *, mxu_bf16):
    """Plain-JAX reference mirroring the PyTorch forward.  With mxu_bf16=True
    it applies the same bf16 casts on MXU inputs as the kernel (f32 accum)."""
    def cast(v):
        return v.astype(jnp.bfloat16) if mxu_bf16 else v
    a = cast(coef)
    act = x.astype(jnp.float32)
    out = act
    for i in range(weights_t.shape[0]):
        h = jnp.dot(cast(act), cast(weights_t[i]),
                    preferred_element_type=jnp.float32) + biases[i]
        z = jnp.dot(a, cast(h), preferred_element_type=jnp.float32)
        act = z
        out = out + z
    return out


if __name__ == "__main__":
    # Small synthetic configuration consistent with the module:
    #   n_layers=3, embedding_size=32, N=48 "edges".
    n_layers = 3
    embedding_size = 32
    n_edges = 48

    key = jax.random.PRNGKey(0)
    k_coef, k_mask, k_x, k_w, k_b = jax.random.split(key, 5)

    # Deterministic "sparse" coefficient matrix (dense storage, ~30% nnz).
    dense = 0.5 * jax.random.normal(k_coef, (n_edges, n_edges), jnp.float32)
    mask = (jax.random.uniform(k_mask, (n_edges, n_edges)) < 0.3).astype(jnp.float32)
    coef = dense * mask

    # Edge embeddings.
    x = jax.random.normal(k_x, (n_edges, embedding_size), jnp.float32)

    # Per-layer Linear parameters.  nn.Linear stores W as (out, in); we
    # pre-transpose to (in, out) so the kernel does cur @ W.T.
    w = 0.05 * jax.random.normal(
        k_w, (n_layers, embedding_size, embedding_size), jnp.float32)
    weights_t = jnp.transpose(w, (0, 2, 1))
    biases = 0.05 * jax.random.normal(
        k_b, (n_layers, 1, embedding_size), jnp.float32)

    out = jax.block_until_ready(lineconv_forward(coef, x, weights_t, biases))

    ref_bf16 = lineconv_reference(coef, x, weights_t, biases, mxu_bf16=True)
    ref_f32 = lineconv_reference(coef, x, weights_t, biases, mxu_bf16=False)

    assert out.shape == (n_edges, embedding_size)
    assert jnp.allclose(out, ref_bf16, atol=2e-3, rtol=2e-3), \
        "mismatch vs bf16-matched reference"
    assert jnp.allclose(out, ref_f32, atol=5e-2, rtol=5e-2), \
        "mismatch vs f32 reference (bf16 MXU inputs, f32 accumulation)"

    print("KERNEL_OK")
</pallas_src>

<mosaic_0001>
module attributes {stable_mosaic.version = 11 : i64} {
  func.func @_lineconv_kernel(%arg0: i32, %arg1: i32, %arg2: memref<128x128xbf16, #tpu.memory_space<vmem>>, %arg3: memref<128x128xf32, #tpu.memory_space<vmem>>, %arg4: memref<1x128x128xbf16, #tpu.memory_space<vmem>>, %arg5: memref<1x1x128xf32, #tpu.memory_space<vmem>>, %arg6: memref<128x128xf32, #tpu.memory_space<vmem>>, %arg7: memref<128x128xbf16, #tpu.memory_space<vmem>>, %arg8: memref<128x128xbf16, #tpu.memory_space<vmem>>) attributes {dimension_semantics = [#tpu.dimension_semantics<arbitrary>, #tpu.dimension_semantics<arbitrary>], iteration_bounds = array<i64: 3, 1>, scalar_prefetch = 0 : i64, scratch_operands = 2 : i64, tpu.core_type = #tpu.core_type<tc>, window_params = [{transform_indices = @transform_0, window_bounds = array<i64: 128, 128>}, {pipeline_mode = #tpu.pipeline_mode<synchronous>, transform_indices = @transform_1, window_bounds = array<i64: 128, 128>}, {transform_indices = @transform_2, window_bounds = array<i64: 1, 128, 128>}, {transform_indices = @transform_3, window_bounds = array<i64: 1, 1, 128>}, {pipeline_mode = #tpu.pipeline_mode<synchronous>, transform_indices = @transform_4, window_bounds = array<i64: 128, 128>}]} {
    %c0_i32 = arith.constant 0 : i32
    %0 = arith.cmpi eq, %arg0, %c0_i32 : i32
    %c0_i32_0 = arith.constant 0 : i32
    %1 = arith.cmpi eq, %arg1, %c0_i32_0 : i32
    %2 = arith.andi %0, %1 : i1
    %3 = arith.extui %2 : i1 to i32
    %c0_i32_1 = arith.constant 0 : i32
    %4 = arith.cmpi ne, %3, %c0_i32_1 : i32
    scf.if %4 {
      %c0_10 = arith.constant 0 : index
      %c0_11 = arith.constant 0 : index
      %21 = vector.load %arg3[%c0_10, %c0_11] : memref<128x128xf32, #tpu.memory_space<vmem>>, vector<128x128xf32>
      %22 = arith.truncf %21 : vector<128x128xf32> to vector<128x128xbf16>
      %c0_12 = arith.constant 0 : index
      %c0_13 = arith.constant 0 : index
      %23 = vector.load %arg7[%c0_12, %c0_13] : memref<128x128xbf16, #tpu.memory_space<vmem>>, vector<128x128xbf16>
      tpu.vector_store %arg7[%c0_12, %c0_13], %22 {strides = array<i32>} : memref<128x128xbf16, #tpu.memory_space<vmem>>, vector<128x128xbf16>,
      %c0_14 = arith.constant 0 : index
      %c0_15 = arith.constant 0 : index
      %24 = vector.load %arg6[%c0_14, %c0_15] : memref<128x128xf32, #tpu.memory_space<vmem>>, vector<128x128xf32>
      tpu.vector_store %arg6[%c0_14, %c0_15], %21 {strides = array<i32>} : memref<128x128xf32, #tpu.memory_space<vmem>>, vector<128x128xf32>,
    } else {
    }
    %c0_i32_2 = arith.constant 0 : i32
    %5 = arith.cmpi eq, %arg1, %c0_i32_2 : i32
    %6 = arith.extui %5 : i1 to i32
    %c0_i32_3 = arith.constant 0 : i32
    %7 = arith.cmpi ne, %6, %c0_i32_3 : i32
    scf.if %7 {
      %c0_10 = arith.constant 0 : index
      %c0_11 = arith.constant 0 : index
      %21 = vector.load %arg7[%c0_10, %c0_11] : memref<128x128xbf16, #tpu.memory_space<vmem>>, vector<128x128xbf16>
      %c0_12 = arith.constant 0 : index
      %c0_13 = arith.constant 0 : index
      %c0_14 = arith.constant 0 : index
      %22 = vector.load %arg4[%c0_12, %c0_13, %c0_14] : memref<1x128x128xbf16, #tpu.memory_space<vmem>>, vector<1x128x128xbf16>
      %23 = vector.shape_cast %22 : vector<1x128x128xbf16> to vector<128x128xbf16>
      %cst_15 = arith.constant dense<0.000000e+00> : vector<128x128xf32>
      %24 = tpu.matmul %21, %23, %cst_15 {dimension_numbers = #tpu.dot_dimension_numbers<[1], [0], [0], [1], [0, 0, 1, 1], [], []>} : vector<128x128xbf16>, vector<128x128xbf16>, vector<128x128xf32> -> vector<128x128xf32>
      %c0_16 = arith.constant 0 : index
      %c0_17 = arith.constant 0 : index
      %c0_18 = arith.constant 0 : index
      %25 = vector.load %arg5[%c0_16, %c0_17, %c0_18] : memref<1x1x128xf32, #tpu.memory_space<vmem>>, vector<1x1x128xf32>
      %26 = vector.shape_cast %25 : vector<1x1x128xf32> to vector<1x128xf32>
      %27 = vector.broadcast %26 : vector<1x128xf32> to vector<128x128xf32>
      %28 = arith.addf %24, %27 : vector<128x128xf32>
      %29 = arith.truncf %28 : vector<128x128xf32> to vector<128x128xbf16>
      %c0_19 = arith.constant 0 : index
      %c0_20 = arith.constant 0 : index
      %30 = vector.load %arg8[%c0_19, %c0_20] : memref<128x128xbf16, #tpu.memory_space<vmem>>, vector<128x128xbf16>
      tpu.vector_store %arg8[%c0_19, %c0_20], %29 {strides = array<i32>} : memref<128x128xbf16, #tpu.memory_space<vmem>>, vector<128x128xbf16>,
    } else {
    }
    %c0 = arith.constant 0 : index
    %c0_4 = arith.constant 0 : index
    %8 = vector.load %arg2[%c0, %c0_4] : memref<128x128xbf16, #tpu.memory_space<vmem>>, vector<128x128xbf16>
    %c0_5 = arith.constant 0 : index
    %c0_6 = arith.constant 0 : index
    %9 = vector.load %arg8[%c0_5, %c0_6] : memref<128x128xbf16, #tpu.memory_space<vmem>>, vector<128x128xbf16>
    %cst = arith.constant dense<0.000000e+00> : vector<128x128xf32>
    %10 = tpu.matmul %8, %9, %cst {dimension_numbers = #tpu.dot_dimension_numbers<[1], [0], [0], [1], [0, 0, 1, 1], [], []>} : vector<128x128xbf16>, vector<128x128xbf16>, vector<128x128xf32> -> vector<128x128xf32>
    %c128_i32 = arith.constant 128 : i32
    %11 = arith.muli %arg1, %c128_i32 : i32
    %12 = tpu.assume_multiple %11, 128 : i32
    %13 = arith.truncf %10 : vector<128x128xf32> to vector<128x128xbf16>
    %14 = arith.index_cast %12 : i32 to index
    %c0_7 = arith.constant 0 : index
    %15 = vector.load %arg7[%14, %c0_7] : memref<128x128xbf16, #tpu.memory_space<vmem>>, vector<128x128xbf16>
    tpu.vector_store %arg7[%14, %c0_7], %13 {strides = array<i32>} : memref<128x128xbf16, #tpu.memory_space<vmem>>, vector<128x128xbf16>,
    %16 = arith.index_cast %12 : i32 to index
    %c0_8 = arith.constant 0 : index
    %17 = vector.load %arg6[%16, %c0_8] : memref<128x128xf32, #tpu.memory_space<vmem>>, vector<128x128xf32>
    %18 = arith.addf %17, %10 : vector<128x128xf32>
    %19 = arith.index_cast %12 : i32 to index
    %c0_9 = arith.constant 0 : index
    %20 = vector.load %arg6[%19, %c0_9] : memref<128x128xf32, #tpu.memory_space<vmem>>, vector<128x128xf32>
    tpu.vector_store %arg6[%19, %c0_9], %18 {strides = array<i32>} : memref<128x128xf32, #tpu.memory_space<vmem>>, vector<128x128xf32>,
    return
  }
  func.func @transform_0(%arg0: i32, %arg1: i32) -> (i32, i32) {
    %c0_i32 = arith.constant 0 : i32
    %c0_i32_0 = arith.constant 0 : i32
    return %arg1, %c0_i32 : i32, i32
  }
  func.func @transform_1(%arg0: i32, %arg1: i32) -> (i32, i32) {
    %c0_i32 = arith.constant 0 : i32
    %c0_i32_0 = arith.constant 0 : i32
    %c0_i32_1 = arith.constant 0 : i32
    return %c0_i32, %c0_i32_0 : i32, i32
  }
  func.func @transform_2(%arg0: i32, %arg1: i32) -> (i32, i32, i32) {
    %c0_i32 = arith.constant 0 : i32
    %c0_i32_0 = arith.constant 0 : i32
    %c0_i32_1 = arith.constant 0 : i32
    return %arg0, %c0_i32, %c0_i32_0 : i32, i32, i32
  }
  func.func @transform_3(%arg0: i32, %arg1: i32) -> (i32, i32, i32) {
    %c0_i32 = arith.constant 0 : i32
    %c0_i32_0 = arith.constant 0 : i32
    %c0_i32_1 = arith.constant 0 : i32
    return %arg0, %c0_i32, %c0_i32_0 : i32, i32, i32
  }
  func.func @transform_4(%arg0: i32, %arg1: i32) -> (i32, i32) {
    %c0_i32 = arith.constant 0 : i32
    %c0_i32_0 = arith.constant 0 : i32
    %c0_i32_1 = arith.constant 0 : i32
    return %c0_i32, %c0_i32_0 : i32, i32
  }
}

</mosaic_0001>

<bundles_post_ra>
// kernel: tpu_custom_call.1
= control target key start
LH: loop header
LB: loop body
LE: loop exit
PB: predicated region body
PF: predicated region fallthrough
CT: control target
= control target key end

     0   :  { %9 = vsyncpa [#allocation5], 0  ;;  %s2052_s0 = inlined_call_operand.hbm [shape: bf16[128,128], index: 0, kind: input, shape index: {}]   ;;  %s2053_s1 = inlined_call_operand.hbm [shape: f32[128,128], index: 1, kind: input, shape index: {}]   ;;  %s2054_s2 = inlined_call_operand.hbm [shape: bf16[3,128,128], index: 2, kind: input, shape index: {}]   ;;  %s2055_s3 = inlined_call_operand.vmem [shape: f32[3,1,128], index: 3, kind: input, shape index: {}]   ;;  %s2056_s4 = inlined_call_operand.hbm [shape: f32[128,128], index: 4, kind: output, shape index: {}]  }
   0x1   :  { %10 = vsyncpa [#allocation8], 0 }
   0x2   :  { %11 = vsyncpa [#allocation6], 0  ;;  %s1870_s15 = smov 0   ;;  %s1872_s16 = smov 0  }
   0x3   :  { %s1874_s17 = smov 0   ;;  %s1876_s18 = smov 0  }
   0x4   :  { %s1878_s19 = smov 0   ;;  %s1880_s20 = smov 0  }
   0x5 LB: > { %s1899_s21 = sadd.s32 4294967295, %s1833_s20   ;;  %p90_p0 = scmp.ne.s32.totalorder %s1821_s17, %s1817_s16  ;;  %s1833_s20 = sphi %s1880_s20, %s17_s20   ;;  %s1829_s19 = sphi %s1878_s19, %s2076_s19   ;;  %s1825_s18 = sphi %s1876_s18, %s2075_s18   ;;  %s1821_s17 = sphi %s1874_s17, %s2074_s17   ;;  %s1817_s16 = sphi %s1872_s16, %s2073_s16   ;;  %s1813_s15 = sphi %s1870_s15, %s2072_s15  }
   0x6   : > { %p91_p1 = scmp.eq.s32.totalorder %s1833_s20, 0  ;;  %p96_p2 = scmp.ne.s32.totalorder %s1817_s16, %s1813_s15 }
   0x7   : > { %p2057_p3 = scmp.eq.s32.totalorder %s1899_s21, 0  ;;  %p1162_p4 = scmp.ge.s32.totalorder %s1833_s20, 1 }
   0x8   : > { %p92_p5 = por %p91_p1, %p90_p0  ;;  %p154_p6 = scmp.lt.s32.totalorder %s1833_s20, 4 }
   0x9   : > { %p1910_p7 = por %p2057_p3, %p96_p2  ;;  %s1835_s24 = smov [#allocation4]  }
   0xa   : > { %p1914_p8 = pnand %p1162_p4, %p154_p6  ;;  %s169_s25 = sshll.u32 %s1835_s24, 4  ;;  %s170_s25 = int_to_ptr.vmem [resolvable:$true] %s169_s25 }
   0xb   : > { %p1573_p11 = scmp.lt.s32.totalorder %s1833_s20, 3  ;;  %s1678_s28 = scalar_lea.vmem %s170_s25, 1024 }
   0xc   : > { %p1560_p9 = pneg %p1914_p8  ;;  %p1679_p0 = scmp.ne.s32.totalorder %s170_s25, %s1678_s28 }
   0xd   : > { %p1927_p12 = pnand %p1573_p11, %p92_p5  ;;  %p1686_p4 = scmp.lt.s32.totalorder %s170_s25, %s170_s25 }
   0xe   : > { %p1922_p10 = pnand %p1560_p9, %p2057_p3  ;;  %p1687_p6 = scmp.lt.s32.totalorder %s1678_s28, %s1678_s28 }
  0x10   : > { %p1669_p13 = pneg %p1922_p10  ;;  %p1688_p9 = por %p1687_p6, %p1686_p4 }
  0x12   : > { %p1681_p1 = pnand %p1679_p0, %p1669_p13 }
  0x14   : > { %p1682_p2 = pneg %p1681_p1 }
  0x16   : > { %p1689_p3 = pnand %p1688_p9, %p1682_p2 }
  0x18   : > { %1692 = shalt.err (!%p1689_p3)
}
  0x19   : > { %s2058_s29 = smov 64   ;;  %s2059_s30 = smov 4  }
  0x1a   : > { %1563 = dma.hbm_to_vmem [thread:$0]  (!%p1922_p10), %s2052_s0, 1024, %s170_s25, [#allocation5], %s2058_s29, %s2058_s29, %s2059_s30  }
  0x1b   : > { %s1838_s7 = smov [#allocation7]  }
  0x1c   : > { %s182_s8 = sshll.u32 %s1838_s7, 4  ;;  %s183_s8 = int_to_ptr.vmem [resolvable:$true] %s182_s8 }
  0x1d   : > { %s1704_s9 = scalar_lea.vmem %s183_s8, 2048  ;;  %p1712_p0 = scmp.lt.s32.totalorder %s183_s8, %s183_s8 }
  0x1e   : > { %p1705_p5 = scmp.ne.s32.totalorder %s183_s8, %s1704_s9  ;;  %p1713_p1 = scmp.lt.s32.totalorder %s1704_s9, %s1704_s9 }
  0x20   : > { %p1707_p3 = pnand %p1705_p5, %p1669_p13  ;;  %p1714_p2 = por %p1713_p1, %p1712_p0 }
  0x22   : > { %p1708_p11 = pneg %p1707_p3 }
  0x24   : > { %p1715_p4 = pnand %p1714_p2, %p1708_p11 }
  0x26   : > { %1718 = shalt.err (!%p1715_p4)
}
  0x27   : > { %s1839_s10 = smov 128   ;;  %s1840_s11 = smov 8  }
  0x28   : > { %1566 = dma.hbm_to_vmem [thread:$0]  (!%p1922_p10), %s2053_s1, 2048, %s183_s8, [#allocation8], %s1839_s10, %s1839_s10, %s1840_s11  }
  0x29   : > { %s83_s14 = sadd.s32 1, %s1821_s17  ;;  %s196_s15 = sand.u32 1, %s1833_s20  }
  0x2a   : > { %s29_s24 = sadd.s32 1, %s1829_s19  ;;  %s198_s25 = sand.u32 1, %s1821_s17  }
  0x2b   : > { %p31_p13 = scmp.ge.s32.totalorder %s29_s24, 3  ;;  %s1166_s28 = sshll.u32 %s198_s25, 6 }
  0x2c   : > { %s1259_s5 = sshll.u32 %s1829_s19, 10  ;;  %s200_s29 = scalar_lea.vmem [#allocation9], %s1166_s28 }
  0x2d   : > { %s2078_s24 = smov (%p31_p13, %s29_s24), 0  ;;  %s206_s9 = scalar_lea.hbm %s2054_s2, %s1259_s5 }
  0x2e   : > { %s80_s26 = ssub.s32 %s1829_s19, %s2078_s24  ;;  %s207_s30 = sshll.u32 %s200_s29, 4  ;;  %s208_s30 = int_to_ptr.vmem [resolvable:$true] %s207_s30 }
  0x2f   : > { %p1964_p6 = scmp.eq.s32.totalorder %s80_s26, 0  ;;  %s197_s10 = scalar_lea.sflag [#allocation5], %s196_s15 }
  0x30   : > { %p1721_p10 = pneg %p1927_p12  ;;  %s1732_s11 = scalar_lea.vmem %s208_s30, 1024 }
  0x31   : > { %p1733_p9 = scmp.ne.s32.totalorder %s208_s30, %s1732_s11  ;;  %s1841_s12 = smov [#allocation9]  }
  0x32   : > { %s1737_s13 = sshll.u32 %s1841_s12, 4  ;;  %s1738_s13 = int_to_ptr.vmem [resolvable:$false] %s1737_s13 }
  0x33   : > { %p1735_p5 = pnand %p1733_p9, %p1721_p10  ;;  %s1739_s25 = scalar_lea.vmem %s1738_s13, 2048 }
  0x34   : > { %p1740_p11 = scmp.lt.s32.totalorder %s208_s30, %s1738_s13  ;;  %p1741_p0 = scmp.lt.s32.totalorder %s1739_s25, %s1732_s11 }
  0x35   : > { %p1736_p3 = pneg %p1735_p5 }
  0x36   : > { %p1742_p1 = por %p1741_p0, %p1740_p11 }
  0x38   : > { %p1743_p2 = pnand %p1742_p1, %p1736_p3 }
  0x3a   : > { %1746 = shalt.err (!%p1743_p2)
}
  0x3b   : > { %s2065_s29 = smov 4   ;;  %s2066_s28 = smov 64  }
  0x3c   : > { %1570 = dma.hbm_to_vmem [thread:$0]  (!%p1927_p12), %s206_s9, 1024, %s208_s30, %s197_s10, %s2066_s28, %s2066_s28, %s2065_s29  }
  0x3d   : > { %s1980_s15 = scalar_select %p1964_p6, %s1821_s17, %s83_s14  }
  0x3e   : > { %225 = sbr.rel (%p1914_p8) target bundleno = 618 (0x26a), region = 36  ;;  %p2067_p4 = scmp.eq.s32.totalorder (!%p1914_p8), %s1899_s21, 0 }
  0x43   : > { %1796 = dma.done.wait (%p2067_p4), [#allocation5], 1024   ;;  %p2068_p13 = pmov %p2067_p4 }
  0x44   : > { %p2069_p10 = pmov %p2067_p4 }
  0x45   : > { %1798 = vsyncadd (%p2068_p13), [#allocation5], 4294966272 }
  0x46   : > { %1800 = dma.done.wait (%p2069_p10), [#allocation8], 2048   ;;  %p2070_p9 = pmov %p2067_p4 }
  0x47   : > { %s235_s27 = sand.u32 1, %s1899_s21   ;;  %s237_s30 = sand.u32 1, %s1817_s16  }
  0x48   : > { %1802 = vsyncadd (%p2070_p9), [#allocation8], 4294965248  ;;  %s1172_s14 = sshll.u32 %s237_s30, 6  ;;  %s236_s23 = scalar_lea.sflag [#allocation5], %s235_s27 }
  0x49   : > { %s1994_s5 = scalar_lea.vmem [#allocation9], %s1172_s14 }
  0x4a   : > { %1804 = dma.done.wait (%p1910_p7), %s236_s23, 1024  }
  0x4b   : > { %1806 = vsyncadd (%p1910_p7), %s236_s23, 4294966272  ;;  %p263_p8 = scmp.lt.s32.totalorder %s1825_s18, 2  ;;  %p267_p12 = scmp.eq.s32.totalorder %s1825_s18, 0 }
  0x4c   : > { %v273_v0 = vld [vmem:[#allocation7] sm:$0xff] (%p267_p12)  ;;  %v274_v1 = vld [vmem:[#allocation7 + $0x8] sm:$0xff] (%p267_p12)  ;;  %v275_v2 = vld [vmem:[#allocation7 + $0x10] sm:$0xff] (%p267_p12) }
  0x4d   : > { %s2080_s18 = smov (!%p263_p8, %s1825_s18), 2  ;;  %272 = sbr.rel (!%p267_p12) target bundleno = 89 (0x59), region = 52  ;;  %v1312_v3 = vpack.c.bf16 (%p267_p12), %v274_v1, %v273_v0  ;;  %369 = vst [vmem:[#allocation10] sm:$0xff] (%p267_p12), %v273_v0  ;;  %370 = vst [vmem:[#allocation10 + $0x8] sm:$0xff] (%p267_p12), %v274_v1  ;;  %v276_v4 = vld [vmem:[#allocation7 + $0x18] sm:$0xff] (%p267_p12)  ;;  %v277_v5 = vld [vmem:[#allocation7 + $0x20] sm:$0xff] (%p267_p12) }
  0x4e   : > { %s265_s9 = scalar_lea.vmem %s2055_s3, %s2080_s18  ;;  %371 = vst [vmem:[#allocation10 + $0x10] sm:$0xff] (%p267_p12), %v275_v2  ;;  %v278_v6 = vld [vmem:[#allocation7 + $0x28] sm:$0xff] (%p267_p12)  ;;  %v1317_v7 = vpack.c.bf16 (%p267_p12), %v276_v4, %v275_v2  ;;  %372 = vst [vmem:[#allocation10 + $0x18] sm:$0xff] (%p267_p12), %v276_v4  ;;  %v279_v9 = vld [vmem:[#allocation7 + $0x30] sm:$0xff] (%p267_p12) }
  0x4f   : > { %v1322_v8 = vpack.c.bf16 (%p267_p12), %v278_v6, %v277_v5  ;;  %373 = vst [vmem:[#allocation10 + $0x20] sm:$0xff] (%p267_p12), %v277_v5  ;;  %374 = vst [vmem:[#allocation10 + $0x28] sm:$0xff] (%p267_p12), %v278_v6  ;;  %v280_v10 = vld [vmem:[#allocation7 + $0x38] sm:$0xff] (%p267_p12)  ;;  %v281_v11 = vld [vmem:[#allocation7 + $0x40] sm:$0xff] (%p267_p12) }
  0x50   : > { %1313 = vst [vmem:[#allocation2] sm:$0xff] (%p267_p12), %v1312_v3   ;;  %v1327_v12 = vpack.c.bf16 (%p267_p12), %v280_v10, %v279_v9  ;;  %375 = vst [vmem:[#allocation10 + $0x30] sm:$0xff] (%p267_p12), %v279_v9  ;;  %v282_v13 = vld [vmem:[#allocation7 + $0x48] sm:$0xff] (%p267_p12)  ;;  %v283_v14 = vld [vmem:[#allocation7 + $0x50] sm:$0xff] (%p267_p12) }
  0x51   : > { %376 = vst [vmem:[#allocation10 + $0x38] sm:$0xff] (%p267_p12), %v280_v10  ;;  %377 = vst [vmem:[#allocation10 + $0x40] sm:$0xff] (%p267_p12), %v281_v11  ;;  %v284_v15 = vld [vmem:[#allocation7 + $0x58] sm:$0xff] (%p267_p12)  ;;  %v1332_v16 = vpack.c.bf16 (%p267_p12), %v282_v13, %v281_v11  ;;  %v285_v18 = vld [vmem:[#allocation7 + $0x60] sm:$0xff] (%p267_p12) }
  0x52   : > { %1429 = vst [vmem:[#allocation2 + $0x8] sm:$0xff] %v1317_v7   ;;  %1430 = vst [vmem:[#allocation2 + $0x10] sm:$0xff] %v1322_v8   ;;  %v1337_v17 = vpack.c.bf16 %v284_v15, %v283_v14  ;;  %v286_v19 = vld [vmem:[#allocation7 + $0x68] sm:$0xff]  ;;  %v287_v20 = vld [vmem:[#allocation7 + $0x70] sm:$0xff] }
  0x53   : > { %378 = vst [vmem:[#allocation10 + $0x48] sm:$0xff] %v282_v13  ;;  %379 = vst [vmem:[#allocation10 + $0x50] sm:$0xff] %v283_v14  ;;  %v1342_v21 = vpack.c.bf16 %v286_v19, %v285_v18  ;;  %v288_v22 = vld [vmem:[#allocation7 + $0x78] sm:$0xff] }
  0x54   : > { %380 = vst [vmem:[#allocation10 + $0x58] sm:$0xff] %v284_v15  ;;  %1431 = vst [vmem:[#allocation2 + $0x18] sm:$0xff] %v1327_v12   ;;  %v1347_v23 = vpack.c.bf16 %v288_v22, %v287_v20 }
  0x55   : > { %381 = vst [vmem:[#allocation10 + $0x60] sm:$0xff] %v285_v18  ;;  %382 = vst [vmem:[#allocation10 + $0x68] sm:$0xff] %v286_v19 }
  0x56   : > { %383 = vst [vmem:[#allocation10 + $0x70] sm:$0xff] %v287_v20  ;;  %1432 = vst [vmem:[#allocation2 + $0x20] sm:$0xff] %v1332_v16  }
  0x57   : > { %1433 = vst [vmem:[#allocation2 + $0x28] sm:$0xff] %v1337_v17   ;;  %384 = vst [vmem:[#allocation10 + $0x78] sm:$0xff] %v288_v22 }
  0x58   : > { %1434 = vst [vmem:[#allocation2 + $0x30] sm:$0xff] %v1342_v21   ;;  %1435 = vst [vmem:[#allocation2 + $0x38] sm:$0xff] %v1347_v23  }
  0x59 PF: > { %v1635_v24 = vld [vmem:[%s1994_s5 + $0x38] sm:$0xff]   ;;  %v1636_v25 = vld [vmem:[%s1994_s5 + $0x30] sm:$0xff]   ;;  %v1637_v26 = vld [vmem:[%s1994_s5 + $0x28] sm:$0xff]   ;;  %s1842_s18 = smov [#allocation10]   ;;  %p1576_p7 = scmp.eq.s32.totalorder %s1899_s21, 2 }
  0x5a   : > { %1482 = vmatprep.subr.bf16.mxu0 %v1635_v24  ;;  %v1638_v27 = vld [vmem:[%s1994_s5 + $0x20] sm:$0xff]   ;;  %v1639_v29 = vld [vmem:[%s1994_s5 + $0x18] sm:$0xff]   ;;  %v1640_v30 = vld [vmem:[%s1994_s5 + $0x10] sm:$0xff]   ;;  %s1065_s8 = sshll.u32 %s1842_s18, 4  ;;  %s1066_s8 = int_to_ptr.vmem [resolvable:$true] %s1065_s8 }
  0x5b   : > { %1483 = vmatpush3.bf16.msra.mxu0 %v1635_v24  ;;  %v1641_v31 = vld [vmem:[%s1994_s5 + $0x8] sm:$0xff]   ;;  %v1642_v32 = vld [vmem:[%s1994_s5] sm:$0xff]   ;;  %v1646_v35 = vld [vmem:[#allocation2 + $0x18] sm:$0xff]   ;;  %s1747_s10 = scalar_lea.vmem %s1066_s8, 2048  ;;  %p1754_p11 = scmp.lt.s32.totalorder %s1066_s8, %s1066_s8 }
  0x5c   : > { %1484 = vmatprep.subr.bf16.mxu0 %v1636_v25  ;;  %v1659_v40 = vld [vmem:[#allocation4] sm:$0xff]   ;;  %p1748_p6 = scmp.ne.s32.totalorder %s1066_s8, %s1747_s10  ;;  %p1755_p0 = scmp.lt.s32.totalorder %s1747_s10, %s1747_s10 }
  0x5d   : > { %v1647_v36 = vld [vmem:[#allocation2 + $0x20] sm:$0xff]   ;;  %1530 = vmatprep.mubr.bf16.mxu1 %v1659_v40 }
  0x5e   : > { %v1643_v28 = vld [vmem:[#allocation2] sm:$0xff]   ;;  %v1648_v37 = vld [vmem:[#allocation2 + $0x28] sm:$0xff]   ;;  %p1749_p5 = pnand %p1748_p6, %p1576_p7  ;;  %p1756_p1 = por %p1755_p0, %p1754_p11 }
  0x5f   : > { %1485 = vmatpush3.bf16.msra.mxu0 %v1636_v25  ;;  %1498 = vmatprep.mubr.bf16.mxu0 %v1643_v28  ;;  %v1649_v38 = vld [vmem:[#allocation2 + $0x30] sm:$0xff]   ;;  %v1650_v39 = vld [vmem:[#allocation2 + $0x38] sm:$0xff]   ;;  %v1190_v42 = vld [vmem:[%s265_s9] ss:$0 sm:$0xff] }
  0x60   : > { %1486 = vmatprep.subr.bf16.mxu0 %v1637_v26  ;;  %v1644_v33 = vld [vmem:[#allocation2 + $0x8] sm:$0xff]   ;;  %v1645_v34 = vld [vmem:[#allocation2 + $0x10] sm:$0xff]   ;;  %v1662_v28 = vld [vmem:[#allocation4 + $0x18] sm:$0xff]   ;;  %p1750_p3 = pneg %p1749_p5 }
  0x62   : > { %p1757_p2 = pnand %p1756_p1, %p1750_p3 }
  0x63   : > { %1487 = vmatpush3.bf16.msra.mxu0 %v1637_v26  ;;  %v1660_v26 = vld [vmem:[#allocation4 + $0x8] sm:$0xff]  }
  0x64   : > { %1488 = vmatprep.subr.bf16.mxu0 %v1638_v27 }
  0x67   : > { %1489 = vmatpush3.bf16.msra.mxu0 %v1638_v27  ;;  %v1661_v27 = vld [vmem:[#allocation4 + $0x10] sm:$0xff]  }
  0x68   : > { %1490 = vmatprep.subr.bf16.mxu0 %v1639_v29 }
  0x6b   : > { %1491 = vmatpush3.bf16.msra.mxu0 %v1639_v29  ;;  %v1663_v29 = vld [vmem:[#allocation4 + $0x20] sm:$0xff]  }
  0x6c   : > { %1492 = vmatprep.subr.bf16.mxu0 %v1640_v30 }
  0x6f   : > { %1493 = vmatpush3.bf16.msra.mxu0 %v1640_v30  ;;  %v1664_v30 = vld [vmem:[#allocation4 + $0x28] sm:$0xff]  }
  0x70   : > { %1494 = vmatprep.subr.bf16.mxu0 %v1641_v31 }
  0x73   : > { %1495 = vmatpush3.bf16.msra.mxu0 %v1641_v31  ;;  %v1665_v31 = vld [vmem:[#allocation4 + $0x30] sm:$0xff]  }
  0x74   : > { %1496 = vmatprep.subr.bf16.mxu0 %v1642_v32 }
  0x77   : > { %1497 = vmatpush3.bf16.msra.mxu0 %v1642_v32  ;;  %v1666_v32 = vld [vmem:[#allocation4 + $0x38] sm:$0xff]  }
  0x7a   : > { %1499 = vmatmul.mubr.bf16.vlgmr.msra.gmra.mxu0 %v1644_v33  ;;  %v1013_v33 = vld [vmem:[#allocation10 + $0x10] sm:$0xff] }
  0x7b   : > { %1502 = vmatprep.mubr.bf16.mxu0 %v1645_v34 }
  0x82   : > { %1503 = vmatmul.mubr.bf16.gmra.mxu0 %v1646_v35  ;;  %v1011_v35 = vld [vmem:[#allocation10] sm:$0xff] }
  0x83   : > { %1506 = vmatprep.mubr.bf16.mxu0 %v1647_v36 }
  0x8a   : > { %1507 = vmatmul.mubr.bf16.gmra.mxu0 %v1648_v37 }
  0x8b   : > { %1510 = vmatprep.mubr.bf16.mxu0 %v1649_v38  ;;  %v1014_v38 = vld [vmem:[#allocation10 + $0x18] sm:$0xff] }
  0x92   : > { %1511 = vmatmul.mubr.bf16.gmra.mxu0 %v1650_v39 }
 0x13a   : > { %v1500_v41 = vpop.f32.mrf.mxu0 }
 0x13b   : > { %v566_v45 = vadd.f32 %v1500_v41, %v1190_v42  ;;  %v1012_v41 = vld [vmem:[#allocation10 + $0x8] sm:$0xff] }
 0x13c   : > { %v557_v43 = vpop.f32.mrf.mxu0 }
 0x13d   : > { %v558_v48 = vadd.f32 %v1190_v42, %v557_v43 }
 0x13e   : > { %v1501_v44 = vpop.f32.mrf.mxu0 }
 0x13f   : > { %v569_v46 = vadd.f32 %v1501_v44, %v1190_v42 }
 0x140   : > { %v560_v47 = vpop.f32.mrf.mxu0 }
 0x141   : > { %v1357_v49 = vpack.c.bf16 %v569_v46, %v566_v45  ;;  %v561_v50 = vadd.f32 %v1190_v42, %v560_v47  ;;  %v1017_v45 = vld [vmem:[#allocation10 + $0x30] sm:$0xff] }
 0x142   : > { %v1504_v51 = vpop.f32.mrf.mxu0 }
 0x143   : > { %1436 = vst [vmem:[#allocation3 + $0x8] sm:$0xff] %v1357_v49   ;;  %v1352_v52 = vpack.c.bf16 %v561_v50, %v558_v48  ;;  %v582_v55 = vadd.f32 %v1504_v51, %v1190_v42  ;;  %v1015_v49 = vld [vmem:[#allocation10 + $0x20] sm:$0xff] }
 0x144   : > { %v573_v53 = vpop.f32.mrf.mxu0 }
 0x145   : > { %1353 = vst [vmem:[#allocation3] sm:$0xff] %v1352_v52   ;;  %v574_v58 = vadd.f32 %v1190_v42, %v573_v53  ;;  %v1018_v52 = vld [vmem:[#allocation10 + $0x38] sm:$0xff] }
 0x146   : > { %v1505_v54 = vpop.f32.mrf.mxu0 }
 0x147   : > { %v585_v56 = vadd.f32 %v1505_v54, %v1190_v42 }
 0x148   : > { %v576_v57 = vpop.f32.mrf.mxu0 }
 0x149   : > { %v1367_v59 = vpack.c.bf16 %v585_v56, %v582_v55  ;;  %v577_v60 = vadd.f32 %v1190_v42, %v576_v57  ;;  %v1016_v55 = vld [vmem:[#allocation10 + $0x28] sm:$0xff] }
 0x14a   : > { %v1508_v61 = vpop.f32.mrf.mxu0  ;;  %v1657_v24 = vld [vmem:[#allocation3 + $0x8] sm:$0xff]  }
 0x14b   : > { %1438 = vst [vmem:[#allocation3 + $0x18] sm:$0xff] %v1367_v59   ;;  %v1362_v62 = vpack.c.bf16 %v577_v60, %v574_v58  ;;  %v598_v1 = vadd.f32 %v1508_v61, %v1190_v42  ;;  %v1021_v59 = vld [vmem:[#allocation10 + $0x50] sm:$0xff] }
 0x14c   : > { %v589_v63 = vpop.f32.mrf.mxu0  ;;  %v1658_v25 = vld [vmem:[#allocation3] sm:$0xff]  }
 0x14d   : > { %1437 = vst [vmem:[#allocation3 + $0x10] sm:$0xff] %v1362_v62   ;;  %v590_v4 = vadd.f32 %v1190_v42, %v589_v63  ;;  %v1019_v63 = vld [vmem:[#allocation10 + $0x40] sm:$0xff] }
 0x14e   : > { %v1509_v0 = vpop.f32.mrf.mxu0 }
 0x14f   : > { %v601_v2 = vadd.f32 %v1509_v0, %v1190_v42 }
 0x150   : > { %v592_v3 = vpop.f32.mrf.mxu0 }
 0x151   : > { %v1377_v5 = vpack.c.bf16 %v601_v2, %v598_v1  ;;  %v593_v6 = vadd.f32 %v1190_v42, %v592_v3  ;;  %v1022_v2 = vld [vmem:[#allocation10 + $0x58] sm:$0xff] }
 0x152   : > { %v1512_v7 = vpop.f32.mrf.mxu0  ;;  %v1655_v22 = vld [vmem:[#allocation3 + $0x18] sm:$0xff]  }
 0x153   : > { %1440 = vst [vmem:[#allocation3 + $0x28] sm:$0xff] %v1377_v5   ;;  %v1372_v8 = vpack.c.bf16 %v593_v6, %v590_v4  ;;  %v614_v11 = vadd.f32 %v1512_v7, %v1190_v42  ;;  %v1020_v5 = vld [vmem:[#allocation10 + $0x48] sm:$0xff] }
 0x154   : > { %v605_v9 = vpop.f32.mrf.mxu0  ;;  %v1656_v23 = vld [vmem:[#allocation3 + $0x10] sm:$0xff]  }
 0x155   : > { %1439 = vst [vmem:[#allocation3 + $0x20] sm:$0xff] %v1372_v8   ;;  %v606_v14 = vadd.f32 %v1190_v42, %v605_v9  ;;  %v1025_v9 = vld [vmem:[#allocation10 + $0x70] sm:$0xff] }
 0x156   : > { %v1513_v10 = vpop.f32.mrf.mxu0 }
 0x157   : > { %v617_v12 = vadd.f32 %v1513_v10, %v1190_v42 }
 0x158   : > { %v608_v13 = vpop.f32.mrf.mxu0 }
 0x159   : > { %v1387_v15 = vpack.c.bf16 %v617_v12, %v614_v11  ;;  %v609_v16 = vadd.f32 %v1190_v42, %v608_v13  ;;  %v1023_v13 = vld [vmem:[#allocation10 + $0x60] sm:$0xff] }
 0x15a   : > { %v1653_v20 = vld [vmem:[#allocation3 + $0x28] sm:$0xff]  }
 0x15b   : > { %1442 = vst [vmem:[#allocation3 + $0x38] sm:$0xff] %v1387_v15   ;;  %v1382_v17 = vpack.c.bf16 %v609_v16, %v606_v14  ;;  %v1026_v16 = vld [vmem:[#allocation10 + $0x78] sm:$0xff] }
 0x15c   : > { %v1654_v21 = vld [vmem:[#allocation3 + $0x20] sm:$0xff]  }
 0x15d   : > { %1441 = vst [vmem:[#allocation3 + $0x30] sm:$0xff] %v1382_v17  }
 0x162   : > { %v1651_v18 = vld [vmem:[#allocation3 + $0x38] sm:$0xff]  }
 0x163   : > { %1514 = vmatprep.subr.bf16.mxu1 %v1651_v18 }
 0x164   : > { %v1652_v19 = vld [vmem:[#allocation3 + $0x30] sm:$0xff]   ;;  %1515 = vmatpush3.bf16.msra.mxu1 %v1651_v18 }
 0x165   : > { %1516 = vmatprep.subr.bf16.mxu1 %v1652_v19 }
 0x168   : > { %1517 = vmatpush3.bf16.msra.mxu1 %v1652_v19  ;;  %v1024_v19 = vld [vmem:[#allocation10 + $0x68] sm:$0xff] }
 0x169   : > { %1518 = vmatprep.subr.bf16.mxu1 %v1653_v20 }
 0x16c   : > { %1519 = vmatpush3.bf16.msra.mxu1 %v1653_v20 }
 0x16d   : > { %1520 = vmatprep.subr.bf16.mxu1 %v1654_v21 }
 0x170   : > { %1521 = vmatpush3.bf16.msra.mxu1 %v1654_v21 }
 0x171   : > { %1522 = vmatprep.subr.bf16.mxu1 %v1655_v22 }
 0x174   : > { %1523 = vmatpush3.bf16.msra.mxu1 %v1655_v22 }
 0x175   : > { %1524 = vmatprep.subr.bf16.mxu1 %v1656_v23 }
 0x178   : > { %1525 = vmatpush3.bf16.msra.mxu1 %v1656_v23 }
 0x179   : > { %1526 = vmatprep.subr.bf16.mxu1 %v1657_v24 }
 0x17c   : > { %1527 = vmatpush3.bf16.msra.mxu1 %v1657_v24 }
 0x17d   : > { %1528 = vmatprep.subr.bf16.mxu1 %v1658_v25 }
 0x180   : > { %1529 = vmatpush3.bf16.msra.mxu1 %v1658_v25 }
 0x183   : > { %1531 = vmatmul.mubr.bf16.vlgmr.msra.gmra.mxu1 %v1660_v26 }
 0x184   : > { %1534 = vmatprep.mubr.bf16.mxu1 %v1661_v27 }
 0x18b   : > { %1535 = vmatmul.mubr.bf16.gmra.mxu1 %v1662_v28 }
 0x18c   : > { %1538 = vmatprep.mubr.bf16.mxu1 %v1663_v29 }
 0x193   : > { %1539 = vmatmul.mubr.bf16.gmra.mxu1 %v1664_v30 }
 0x194   : > { %1542 = vmatprep.mubr.bf16.mxu1 %v1665_v31 }
 0x19b   : > { %1543 = vmatmul.mubr.bf16.gmra.mxu1 %v1666_v32 }
 0x243   : > { %v1532_v34 = vpop.f32.mrf.mxu1 }
 0x244   : > { %v1029_v36 = vadd.f32 %v1532_v34, %v1013_v33 }
 0x245   : > { %v862_v37 = vpop.f32.mrf.mxu1 }
 0x246   : > { %1045 = vst [vmem:[#allocation10 + $0x10] sm:$0xff] %v1029_v36  ;;  %v1027_v39 = vadd.f32 %v1011_v35, %v862_v37 }
 0x247   : > { %v1533_v40 = vpop.f32.mrf.mxu1 }
 0x248   : > { %1043 = vst [vmem:[#allocation10] sm:$0xff] %v1027_v39  ;;  %v1397_v42 = vpack.c.bf16 %v1533_v40, %v1532_v34  ;;  %v1030_v43 = vadd.f32 %v1533_v40, %v1014_v38 }
 0x249   : > { %v865_v44 = vpop.f32.mrf.mxu1 }
 0x24a   : > { %1443 = vst [vmem:[#allocation2 + $0x8] sm:$0xff] %v1397_v42   ;;  %1046 = vst [vmem:[#allocation10 + $0x18] sm:$0xff] %v1030_v43  ;;  %v1392_v46 = vpack.c.bf16 %v865_v44, %v862_v37  ;;  %v1028_v47 = vadd.f32 %v1012_v41, %v865_v44 }
 0x24b   : > { %v1536_v48 = vpop.f32.mrf.mxu1 }
 0x24c   : > { %1393 = vst [vmem:[#allocation2] sm:$0xff] %v1392_v46   ;;  %1044 = vst [vmem:[#allocation10 + $0x8] sm:$0xff] %v1028_v47  ;;  %v1033_v50 = vadd.f32 %v1536_v48, %v1017_v45 }
 0x24d   : > { %v878_v51 = vpop.f32.mrf.mxu1 }
 0x24e   : > { %1049 = vst [vmem:[#allocation10 + $0x30] sm:$0xff] %v1033_v50  ;;  %v1031_v53 = vadd.f32 %v1015_v49, %v878_v51 }
 0x24f   : > { %v1537_v54 = vpop.f32.mrf.mxu1 }
 0x250   : > { %1047 = vst [vmem:[#allocation10 + $0x20] sm:$0xff] %v1031_v53  ;;  %v1407_v56 = vpack.c.bf16 %v1537_v54, %v1536_v48  ;;  %v1034_v57 = vadd.f32 %v1537_v54, %v1018_v52 }
 0x251   : > { %v881_v58 = vpop.f32.mrf.mxu1 }
 0x252   : > { %1445 = vst [vmem:[#allocation2 + $0x18] sm:$0xff] %v1407_v56   ;;  %1050 = vst [vmem:[#allocation10 + $0x38] sm:$0xff] %v1034_v57  ;;  %v1402_v60 = vpack.c.bf16 %v881_v58, %v878_v51  ;;  %v1032_v61 = vadd.f32 %v1016_v55, %v881_v58 }
 0x253   : > { %v1540_v62 = vpop.f32.mrf.mxu1 }
 0x254   : > { %1444 = vst [vmem:[#allocation2 + $0x10] sm:$0xff] %v1402_v60   ;;  %1048 = vst [vmem:[#allocation10 + $0x28] sm:$0xff] %v1032_v61  ;;  %v1037_v0 = vadd.f32 %v1540_v62, %v1021_v59 }
 0x255   : > { %v894_v1 = vpop.f32.mrf.mxu1 }
 0x256   : > { %1053 = vst [vmem:[#allocation10 + $0x50] sm:$0xff] %v1037_v0  ;;  %v1035_v3 = vadd.f32 %v1019_v63, %v894_v1 }
 0x257   : > { %v1541_v4 = vpop.f32.mrf.mxu1 }
 0x258   : > { %1051 = vst [vmem:[#allocation10 + $0x40] sm:$0xff] %v1035_v3  ;;  %v1417_v6 = vpack.c.bf16 %v1541_v4, %v1540_v62  ;;  %v1038_v7 = vadd.f32 %v1541_v4, %v1022_v2 }
 0x259   : > { %v897_v8 = vpop.f32.mrf.mxu1 }
 0x25a   : > { %1447 = vst [vmem:[#allocation2 + $0x28] sm:$0xff] %v1417_v6   ;;  %1054 = vst [vmem:[#allocation10 + $0x58] sm:$0xff] %v1038_v7  ;;  %v1412_v10 = vpack.c.bf16 %v897_v8, %v894_v1  ;;  %v1036_v11 = vadd.f32 %v1020_v5, %v897_v8 }
 0x25b   : > { %v1544_v12 = vpop.f32.mrf.mxu1 }
 0x25c   : > { %1446 = vst [vmem:[#allocation2 + $0x20] sm:$0xff] %v1412_v10   ;;  %1052 = vst [vmem:[#allocation10 + $0x48] sm:$0xff] %v1036_v11  ;;  %v1041_v14 = vadd.f32 %v1544_v12, %v1025_v9 }
 0x25d   : > { %v910_v15 = vpop.f32.mrf.mxu1 }
 0x25e   : > { %1057 = vst [vmem:[#allocation10 + $0x70] sm:$0xff] %v1041_v14  ;;  %v1039_v17 = vadd.f32 %v1023_v13, %v910_v15 }
 0x25f   : > { %v1545_v18 = vpop.f32.mrf.mxu1 }
 0x260   : > { %1055 = vst [vmem:[#allocation10 + $0x60] sm:$0xff] %v1039_v17  ;;  %v1427_v20 = vpack.c.bf16 %v1545_v18, %v1544_v12  ;;  %v1042_v21 = vadd.f32 %v1545_v18, %v1026_v16 }
 0x261   : > { %v913_v22 = vpop.f32.mrf.mxu1 }
 0x262   : > { %1449 = vst [vmem:[#allocation2 + $0x38] sm:$0xff] %v1427_v20   ;;  %1058 = vst [vmem:[#allocation10 + $0x78] sm:$0xff] %v1042_v21  ;;  %v1422_v23 = vpack.c.bf16 %v913_v22, %v910_v15  ;;  %v1040_v24 = vadd.f32 %v1024_v19, %v913_v22 }
 0x264   : > { %1448 = vst [vmem:[#allocation2 + $0x30] sm:$0xff] %v1422_v23   ;;  %1056 = vst [vmem:[#allocation10 + $0x68] sm:$0xff] %v1040_v24 }
 0x265   : > { %1760 = shalt.err (!%p1757_p2)
}
 0x266   : > { %s1843_s11 = smov 128   ;;  %s1844_s12 = smov 8  }
 0x267   : > { %1557 = dma.vmem_to_hbm [thread:$0]  (%p1576_p7), %s1066_s8, 2048, %s2056_s4, [#allocation6], %s1843_s11, %s1843_s11, %s1844_s12  }
 0x268   : > { %1808 = dma.done.wait (%p1576_p7), [#allocation6], 2048  }
 0x269   : > { %1810 = vsyncadd (%p1576_p7), [#allocation6], 4294965248 }
 0x26a PF: > { %s17_s20 = sadd.s32 1, %s1833_s20   ;;  %s2071_s29 = smov %s1980_s15 }
 0x26b   : > { %p14_p4 = scmp.ge.s32.totalorder %s17_s20, 5   ;;  %s2072_s15 = smov %s1817_s16 }
 0x26c   : > { %s2073_s16 = smov %s1821_s17  ;;  %s2074_s17 = smov %s2071_s29 }
 0x26d   : > { %s2075_s18 = smov %s1829_s19  ;;  %s2076_s19 = smov %s2078_s24 }
 0x26e   :  { %16 = sbr.rel (!%p14_p4) target bundleno = 5 (0x5), region = 94 }
 0x273   :  { %1081 = vsyncpa [#allocation5], 1 }
 0x274   :  { %1083 = vsyncpa [#allocation5 + $0x1], 1 }
 0x275   :  { %1084 = vsyncpa [#allocation8], 1 }
 0x276   :  { %1085 = vsyncpa [#allocation6], 1 }
 0x277   :  { %1087 = vsyncpa [#allocation6 + $0x1], 1 }

</bundles_post_ra>
